<compile_context>
chip_gen: v7x
topology: tpu7x:2x2x1
jax: 0.10.0
libtpu: 0.0.40
codegen_flags: <defaults>
</compile_context>

<pallas_src>
from functools import partial

import numpy as np
import jax
import jax.numpy as jnp
from jax import lax
from jax.experimental import pallas as pl
from jax.experimental.pallas import tpu as pltpu


def _round_up(x, m):
    return (x + m - 1) // m * m


# ----------------------- wrapper-side constant builders -----------------------

def _conv_pool_matrix(w_oihw, h_in, w_in, out_pad):
    """Fuse a VALID 3x3 conv (PyTorch cross-correlation) with the following
    2x2/stride-2 max pool.  Returns (cin*h_in*w_in, 4*out_pad): column block k
    computes pool-window corner k for every pooled output position
    (channel-major flattening on both sides, zero-padded to out_pad lanes).
    max over the 4 blocks == pool(conv(x)); bias/relu commute and are applied
    after the max."""
    wnp = np.asarray(w_oihw, np.float32)
    cout, cin, kh, kw = wnp.shape
    hc, wc = h_in - kh + 1, w_in - kw + 1      # conv output spatial
    ho, wo = hc // 2, wc // 2                  # pooled output spatial
    assert cout * ho * wo <= out_pad
    M = np.zeros((cin * h_in * w_in, 4 * out_pad), np.float32)
    k = 0
    for di in range(2):
        for dj in range(2):
            for co in range(cout):
                for ci in range(cin):
                    for ki in range(kh):
                        for kj in range(kw):
                            for oi in range(ho):
                                for oj in range(wo):
                                    src = (ci * h_in * w_in
                                           + (2 * oi + di + ki) * w_in
                                           + (2 * oj + dj + kj))
                                    dst = k * out_pad + co * ho * wo + oi * wo + oj
                                    M[src, dst] += wnp[co, ci, ki, kj]
            k += 1
    return M


def _bias_row(b, spatial, out_pad):
    """(1, out_pad) per-position conv bias row (channel-major), zero padded."""
    row = np.zeros((1, out_pad), np.float32)
    bnp = np.asarray(b, np.float32)
    row[0, :bnp.shape[0] * spatial] = np.repeat(bnp, spatial)
    return row


def build_params(c1w, c1b, c2w, c2b, w1, b1, w2, b2):
    """Build all resident kernel constants ONCE as device arrays (bf16 matrices,
    f32 bias rows)."""
    m1 = _conv_pool_matrix(c1w, 14, 14, 256)            # (196, 1024)  conv1+pool2
    b1c = _bias_row(c1b, 6 * 6, 256)                    # (1, 256)
    m2 = np.zeros((256, 512), np.float32)               # conv2+pool3, rows padded
    m2[:180] = _conv_pool_matrix(c2w, 6, 6, 128)        # (180, 512)
    b2c = _bias_row(c2b, 2 * 2, 128)                    # (1, 128)

    w1t = np.zeros((128, 128), np.float32)              # fc1 W^T, zero padded
    w1t[:20, :10] = np.asarray(w1, np.float32).T
    b1f = np.zeros((1, 128), np.float32)
    b1f[0, :10] = np.asarray(b1, np.float32)
    w2t = np.zeros((128, 10), np.float32)               # fc2 W^T
    w2t[:10, :] = np.asarray(w2, np.float32).T
    b2f = np.asarray(b2, np.float32)[None, :]           # (1, 10)

    bf = lambda a: jnp.asarray(a, jnp.bfloat16)
    f32 = lambda a: jnp.asarray(a, jnp.float32)
    return (bf(m1), f32(b1c), bf(m2), f32(b2c), bf(w1t), f32(b1f), bf(w2t), f32(b2f))


# --------------------------------- kernel ------------------------------------

def cnn_kernel(x_ref, m1_ref, b1c_ref, m2_ref, b2c_ref,
               w1t_ref, b1f_ref, w2t_ref, b2f_ref, out_ref):
    def mm(a, b):
        return jnp.dot(a, b, preferred_element_type=jnp.float32)

    def corner_max(z, width):
        # max over the 4 lane-aligned corner blocks (VPU; static 128-mult slices)
        r = z[:, :width]
        for k in range(1, 4):
            r = jnp.maximum(r, z[:, k * width:(k + 1) * width])
        return r

    bf16 = jnp.bfloat16
    x = x_ref[...]                                                    # (B,196) bf16
    z1 = mm(x, m1_ref[...])                                           # (B,1024) f32
    p2 = jnp.maximum(corner_max(z1, 256) + b1c_ref[...], 0.0)         # (B,256)  = pool(relu(conv1))
    z2 = mm(p2.astype(bf16), m2_ref[...])                             # (B,512)  f32
    p3 = jnp.maximum(corner_max(z2, 128) + b2c_ref[...], 0.0)         # (B,128)  = pool(relu(conv2)), torch flatten order
    h = jnp.maximum(mm(p3.astype(bf16), w1t_ref[...]) + b1f_ref[...], 0.0)  # (B,128) fc1+relu
    y = mm(h.astype(bf16), w2t_ref[...]) + b2f_ref[...]               # (B,10)   fc2
    out_ref[...] = y.astype(out_ref.dtype)


# -------------------------------- wrapper -------------------------------------

@partial(jax.jit, static_argnames=("block_b",))
def forward(x_nchw, params, block_b=512):
    """x_nchw: (N, 1, 28, 28) float32 -> (N, 10) float32."""
    m1, b1c, m2, b2c, w1t, b1f, w2t, b2f = params
    N = x_nchw.shape[0]
    B = min(block_b, _round_up(max(N, 1), 8))
    Np = _round_up(N, B)

    # pool1 is parameter-free: do it here (jnp), flatten to 196 lanes, bf16,
    # zero-pad the batch to a multiple of the block.
    xp = x_nchw.reshape(N, 14, 2, 14, 2).max(axis=(2, 4)).reshape(N, 196)
    xp = xp.astype(jnp.bfloat16)
    if Np != N:
        xp = jnp.pad(xp, ((0, Np - N), (0, 0)))

    def const_spec(shape):
        return pl.BlockSpec(shape, lambda n: (0,) * len(shape))

    grid_spec = pltpu.PrefetchScalarGridSpec(
        num_scalar_prefetch=0,
        grid=(Np // B,),
        in_specs=[
            pl.BlockSpec((B, 196), lambda n: (n, 0)),   # pooled x block per step
            const_spec((196, 1024)),                    # conv1+pool2 corner matrix (bf16)
            const_spec((1, 256)),                       # conv1 bias row (f32)
            const_spec((256, 512)),                     # conv2+pool3 corner matrix (bf16)
            const_spec((1, 128)),                       # conv2 bias row (f32)
            const_spec((128, 128)),                     # fc1 W^T (bf16)
            const_spec((1, 128)),                       # fc1 b   (f32)
            const_spec((128, 10)),                      # fc2 W^T (bf16)
            const_spec((1, 10)),                        # fc2 b   (f32)
        ],
        out_specs=pl.BlockSpec((B, 10), lambda n: (n, 0)),
    )
    out = pl.pallas_call(
        cnn_kernel,
        out_shape=jax.ShapeDtypeStruct((Np, 10), jnp.float32),
        grid_spec=grid_spec,
        compiler_params=pltpu.CompilerParams(
            dimension_semantics=("parallel",)),
    )(xp, m1, b1c, m2, b2c, w1t, b1f, w2t, b2f)
    return out[:N]


# ------------------------- pure-JAX references (check) -------------------------

def _pool(a):
    n, c, h, w = a.shape
    return a.reshape(n, c, h // 2, 2, w // 2, 2).max(axis=(3, 5))


def ref_forward_f32(x, c1w, c1b, c2w, c2b, w1, b1, w2, b2):
    def conv(a, w, b):
        o = lax.conv_general_dilated(a, w, (1, 1), 'VALID',
                                     dimension_numbers=('NCHW', 'OIHW', 'NCHW'))
        return o + b[None, :, None, None]
    a = _pool(x)
    a = jax.nn.relu(conv(a, c1w, c1b)); a = _pool(a)
    a = jax.nn.relu(conv(a, c2w, c2b)); a = _pool(a)
    a = a.reshape(a.shape[0], -1)
    a = jax.nn.relu(a @ w1.T + b1)
    return a @ w2.T + b2


def ref_forward_bf16(x, c1w, c1b, c2w, c2b, w1, b1, w2, b2):
    """Reference with the kernel's exact precision policy: bf16 matmul operands,
    f32 accumulation, f32 elementwise. Used for a tight layout check."""
    bf = lambda a: a.astype(jnp.bfloat16)
    def conv(a, w, b):
        o = lax.conv_general_dilated(bf(a), bf(w), (1, 1), 'VALID',
                                     dimension_numbers=('NCHW', 'OIHW', 'NCHW'),
                                     preferred_element_type=jnp.float32)
        return o + b[None, :, None, None]
    a = _pool(x)
    a = jax.nn.relu(conv(a, c1w, c1b)); a = _pool(a)
    a = jax.nn.relu(conv(a, c2w, c2b)); a = _pool(a)
    a = a.reshape(a.shape[0], -1)
    a = jax.nn.relu(jnp.dot(bf(a), bf(w1.T), preferred_element_type=jnp.float32) + b1)
    return jnp.dot(bf(a), bf(w2.T), preferred_element_type=jnp.float32) + b2


# ---------------------------------- main --------------------------------------

if __name__ == "__main__":
    key = jax.random.PRNGKey(0)
    ks = jax.random.split(key, 9)
    N = 6  # small batch; exercises block rounding to a multiple of 8
    # Forward implies 28x28 single-channel input (fc1 expects 5*2*2 features).
    x = jax.random.normal(ks[0], (N, 1, 28, 28), jnp.float32)
    c1w = 0.2 * jax.random.normal(ks[1], (5, 1, 3, 3), jnp.float32)
    c1b = 0.1 * jax.random.normal(ks[2], (5,), jnp.float32)
    c2w = 0.2 * jax.random.normal(ks[3], (5, 5, 3, 3), jnp.float32)
    c2b = 0.1 * jax.random.normal(ks[4], (5,), jnp.float32)
    w1 = 0.2 * jax.random.normal(ks[5], (10, 20), jnp.float32)
    b1 = 0.1 * jax.random.normal(ks[6], (10,), jnp.float32)
    w2 = 0.2 * jax.random.normal(ks[7], (10, 10), jnp.float32)
    b2 = 0.1 * jax.random.normal(ks[8], (10,), jnp.float32)

    params = build_params(c1w, c1b, c2w, c2b, w1, b1, w2, b2)
    out = jax.block_until_ready(forward(x, params))
    assert out.shape == (N, 10), out.shape

    # Tight check vs a precision-matched (bf16-operand / f32-accumulate) reference:
    # catches any layout/index mapping bug without bf16 slack masking it.
    ref_m = ref_forward_bf16(x, c1w, c1b, c2w, c2b, w1, b1, w2, b2)
    err_m = float(jnp.max(jnp.abs(out - ref_m)))
    assert err_m < 5e-3, f"mismatch vs precision-matched reference: {err_m}"

    # Sanity check vs the full-f32 reference (slack covers bf16 weight/activation rounding).
    ref_f = ref_forward_f32(x, c1w, c1b, c2w, c2b, w1, b1, w2, b2)
    err_f = float(jnp.max(jnp.abs(out - ref_f)))
    assert err_f < 1e-1, f"mismatch vs f32 reference: {err_f}"

    print("KERNEL_OK")
</pallas_src>

<mosaic_0001>
module attributes {stable_mosaic.version = 11 : i64} {
  func.func @cnn_kernel(%arg0: i32, %arg1: memref<8x196xbf16, #tpu.memory_space<vmem>>, %arg2: memref<196x1024xbf16, #tpu.memory_space<vmem>>, %arg3: memref<1x256xf32, #tpu.memory_space<vmem>>, %arg4: memref<256x512xbf16, #tpu.memory_space<vmem>>, %arg5: memref<1x128xf32, #tpu.memory_space<vmem>>, %arg6: memref<128x128xbf16, #tpu.memory_space<vmem>>, %arg7: memref<1x128xf32, #tpu.memory_space<vmem>>, %arg8: memref<128x10xbf16, #tpu.memory_space<vmem>>, %arg9: memref<1x10xf32, #tpu.memory_space<vmem>>, %arg10: memref<8x10xf32, #tpu.memory_space<vmem>>) attributes {dimension_semantics = [#tpu.dimension_semantics<parallel>], iteration_bounds = array<i64: 1>, scalar_prefetch = 0 : i64, scratch_operands = 0 : i64, tpu.core_type = #tpu.core_type<tc>, window_params = [{transform_indices = @transform_0, window_bounds = array<i64: 8, 196>}, {pipeline_mode = #tpu.pipeline_mode<synchronous>, transform_indices = @transform_1, window_bounds = array<i64: 196, 1024>}, {pipeline_mode = #tpu.pipeline_mode<synchronous>, transform_indices = @transform_2, window_bounds = array<i64: 1, 256>}, {pipeline_mode = #tpu.pipeline_mode<synchronous>, transform_indices = @transform_3, window_bounds = array<i64: 256, 512>}, {pipeline_mode = #tpu.pipeline_mode<synchronous>, transform_indices = @transform_4, window_bounds = array<i64: 1, 128>}, {pipeline_mode = #tpu.pipeline_mode<synchronous>, transform_indices = @transform_5, window_bounds = array<i64: 128, 128>}, {pipeline_mode = #tpu.pipeline_mode<synchronous>, transform_indices = @transform_6, window_bounds = array<i64: 1, 128>}, {pipeline_mode = #tpu.pipeline_mode<synchronous>, transform_indices = @transform_7, window_bounds = array<i64: 128, 10>}, {pipeline_mode = #tpu.pipeline_mode<synchronous>, transform_indices = @transform_8, window_bounds = array<i64: 1, 10>}, {transform_indices = @transform_9, window_bounds = array<i64: 8, 10>}]} {
    %c0 = arith.constant 0 : index
    %c0_0 = arith.constant 0 : index
    %0 = vector.load %arg1[%c0, %c0_0] : memref<8x196xbf16, #tpu.memory_space<vmem>>, vector<8x196xbf16>
    %c0_1 = arith.constant 0 : index
    %c0_2 = arith.constant 0 : index
    %1 = vector.load %arg2[%c0_1, %c0_2] : memref<196x1024xbf16, #tpu.memory_space<vmem>>, vector<196x1024xbf16>
    %cst = arith.constant dense<0.000000e+00> : vector<8x1024xf32>
    %2 = tpu.matmul %0, %1, %cst {dimension_numbers = #tpu.dot_dimension_numbers<[1], [0], [0], [1], [0, 0, 1, 1], [], []>} : vector<8x196xbf16>, vector<196x1024xbf16>, vector<8x1024xf32> -> vector<8x1024xf32>
    %3 = vector.extract_strided_slice %2 {offsets = [0, 0], sizes = [8, 256], strides = [1, 1]} : vector<8x1024xf32> to vector<8x256xf32>
    %4 = vector.extract_strided_slice %2 {offsets = [0, 256], sizes = [8, 256], strides = [1, 1]} : vector<8x1024xf32> to vector<8x256xf32>
    %5 = arith.maximumf %3, %4 : vector<8x256xf32>
    %6 = vector.extract_strided_slice %2 {offsets = [0, 512], sizes = [8, 256], strides = [1, 1]} : vector<8x1024xf32> to vector<8x256xf32>
    %7 = arith.maximumf %5, %6 : vector<8x256xf32>
    %8 = vector.extract_strided_slice %2 {offsets = [0, 768], sizes = [8, 256], strides = [1, 1]} : vector<8x1024xf32> to vector<8x256xf32>
    %9 = arith.maximumf %7, %8 : vector<8x256xf32>
    %c0_3 = arith.constant 0 : index
    %c0_4 = arith.constant 0 : index
    %10 = vector.load %arg3[%c0_3, %c0_4] : memref<1x256xf32, #tpu.memory_space<vmem>>, vector<1x256xf32>
    %11 = vector.broadcast %10 : vector<1x256xf32> to vector<8x256xf32>
    %12 = arith.addf %9, %11 : vector<8x256xf32>
    %cst_5 = arith.constant 0.000000e+00 : f32
    %13 = vector.broadcast %cst_5 : f32 to vector<8x256xf32>
    %14 = arith.maximumf %12, %13 : vector<8x256xf32>
    %15 = arith.truncf %14 : vector<8x256xf32> to vector<8x256xbf16>
    %c0_6 = arith.constant 0 : index
    %c0_7 = arith.constant 0 : index
    %16 = vector.load %arg4[%c0_6, %c0_7] : memref<256x512xbf16, #tpu.memory_space<vmem>>, vector<256x512xbf16>
    %cst_8 = arith.constant dense<0.000000e+00> : vector<8x512xf32>
    %17 = tpu.matmul %15, %16, %cst_8 {dimension_numbers = #tpu.dot_dimension_numbers<[1], [0], [0], [1], [0, 0, 1, 1], [], []>} : vector<8x256xbf16>, vector<256x512xbf16>, vector<8x512xf32> -> vector<8x512xf32>
    %18 = vector.extract_strided_slice %17 {offsets = [0, 0], sizes = [8, 128], strides = [1, 1]} : vector<8x512xf32> to vector<8x128xf32>
    %19 = vector.extract_strided_slice %17 {offsets = [0, 128], sizes = [8, 128], strides = [1, 1]} : vector<8x512xf32> to vector<8x128xf32>
    %20 = arith.maximumf %18, %19 : vector<8x128xf32>
    %21 = vector.extract_strided_slice %17 {offsets = [0, 256], sizes = [8, 128], strides = [1, 1]} : vector<8x512xf32> to vector<8x128xf32>
    %22 = arith.maximumf %20, %21 : vector<8x128xf32>
    %23 = vector.extract_strided_slice %17 {offsets = [0, 384], sizes = [8, 128], strides = [1, 1]} : vector<8x512xf32> to vector<8x128xf32>
    %24 = arith.maximumf %22, %23 : vector<8x128xf32>
    %c0_9 = arith.constant 0 : index
    %c0_10 = arith.constant 0 : index
    %25 = vector.load %arg5[%c0_9, %c0_10] : memref<1x128xf32, #tpu.memory_space<vmem>>, vector<1x128xf32>
    %26 = vector.broadcast %25 : vector<1x128xf32> to vector<8x128xf32>
    %27 = arith.addf %24, %26 : vector<8x128xf32>
    %cst_11 = arith.constant 0.000000e+00 : f32
    %28 = vector.broadcast %cst_11 : f32 to vector<8x128xf32>
    %29 = arith.maximumf %27, %28 : vector<8x128xf32>
    %30 = arith.truncf %29 : vector<8x128xf32> to vector<8x128xbf16>
    %c0_12 = arith.constant 0 : index
    %c0_13 = arith.constant 0 : index
    %31 = vector.load %arg6[%c0_12, %c0_13] : memref<128x128xbf16, #tpu.memory_space<vmem>>, vector<128x128xbf16>
    %cst_14 = arith.constant dense<0.000000e+00> : vector<8x128xf32>
    %32 = tpu.matmul %30, %31, %cst_14 {dimension_numbers = #tpu.dot_dimension_numbers<[1], [0], [0], [1], [0, 0, 1, 1], [], []>} : vector<8x128xbf16>, vector<128x128xbf16>, vector<8x128xf32> -> vector<8x128xf32>
    %c0_15 = arith.constant 0 : index
    %c0_16 = arith.constant 0 : index
    %33 = vector.load %arg7[%c0_15, %c0_16] : memref<1x128xf32, #tpu.memory_space<vmem>>, vector<1x128xf32>
    %34 = vector.broadcast %33 : vector<1x128xf32> to vector<8x128xf32>
    %35 = arith.addf %32, %34 : vector<8x128xf32>
    %cst_17 = arith.constant 0.000000e+00 : f32
    %36 = vector.broadcast %cst_17 : f32 to vector<8x128xf32>
    %37 = arith.maximumf %35, %36 : vector<8x128xf32>
    %38 = arith.truncf %37 : vector<8x128xf32> to vector<8x128xbf16>
    %c0_18 = arith.constant 0 : index
    %c0_19 = arith.constant 0 : index
    %39 = vector.load %arg8[%c0_18, %c0_19] : memref<128x10xbf16, #tpu.memory_space<vmem>>, vector<128x10xbf16>
    %cst_20 = arith.constant dense<0.000000e+00> : vector<8x10xf32>
    %40 = tpu.matmul %38, %39, %cst_20 {dimension_numbers = #tpu.dot_dimension_numbers<[1], [0], [0], [1], [0, 0, 1, 1], [], []>} : vector<8x128xbf16>, vector<128x10xbf16>, vector<8x10xf32> -> vector<8x10xf32>
    %c0_21 = arith.constant 0 : index
    %c0_22 = arith.constant 0 : index
    %41 = vector.load %arg9[%c0_21, %c0_22] : memref<1x10xf32, #tpu.memory_space<vmem>>, vector<1x10xf32>
    %42 = vector.broadcast %41 : vector<1x10xf32> to vector<8x10xf32>
    %43 = arith.addf %40, %42 : vector<8x10xf32>
    %c0_23 = arith.constant 0 : index
    %c0_24 = arith.constant 0 : index
    %44 = vector.load %arg10[%c0_23, %c0_24] : memref<8x10xf32, #tpu.memory_space<vmem>>, vector<8x10xf32>
    tpu.vector_store %arg10[%c0_23, %c0_24], %43 {strides = array<i32>} : memref<8x10xf32, #tpu.memory_space<vmem>>, vector<8x10xf32>,
    return
  }
  func.func @transform_0(%arg0: i32) -> (i32, i32) {
    %c0_i32 = arith.constant 0 : i32
    %c0_i32_0 = arith.constant 0 : i32
    return %arg0, %c0_i32 : i32, i32
  }
  func.func @transform_1(%arg0: i32) -> (i32, i32) {
    %c0_i32 = arith.constant 0 : i32
    %c0_i32_0 = arith.constant 0 : i32
    %c0_i32_1 = arith.constant 0 : i32
    return %c0_i32, %c0_i32_0 : i32, i32
  }
  func.func @transform_2(%arg0: i32) -> (i32, i32) {
    %c0_i32 = arith.constant 0 : i32
    %c0_i32_0 = arith.constant 0 : i32
    %c0_i32_1 = arith.constant 0 : i32
    return %c0_i32, %c0_i32_0 : i32, i32
  }
  func.func @transform_3(%arg0: i32) -> (i32, i32) {
    %c0_i32 = arith.constant 0 : i32
    %c0_i32_0 = arith.constant 0 : i32
    %c0_i32_1 = arith.constant 0 : i32
    return %c0_i32, %c0_i32_0 : i32, i32
  }
  func.func @transform_4(%arg0: i32) -> (i32, i32) {
    %c0_i32 = arith.constant 0 : i32
    %c0_i32_0 = arith.constant 0 : i32
    %c0_i32_1 = arith.constant 0 : i32
    return %c0_i32, %c0_i32_0 : i32, i32
  }
  func.func @transform_5(%arg0: i32) -> (i32, i32) {
    %c0_i32 = arith.constant 0 : i32
    %c0_i32_0 = arith.constant 0 : i32
    %c0_i32_1 = arith.constant 0 : i32
    return %c0_i32, %c0_i32_0 : i32, i32
  }
  func.func @transform_6(%arg0: i32) -> (i32, i32) {
    %c0_i32 = arith.constant 0 : i32
    %c0_i32_0 = arith.constant 0 : i32
    %c0_i32_1 = arith.constant 0 : i32
    return %c0_i32, %c0_i32_0 : i32, i32
  }
  func.func @transform_7(%arg0: i32) -> (i32, i32) {
    %c0_i32 = arith.constant 0 : i32
    %c0_i32_0 = arith.constant 0 : i32
    %c0_i32_1 = arith.constant 0 : i32
    return %c0_i32, %c0_i32_0 : i32, i32
  }
  func.func @transform_8(%arg0: i32) -> (i32, i32) {
    %c0_i32 = arith.constant 0 : i32
    %c0_i32_0 = arith.constant 0 : i32
    %c0_i32_1 = arith.constant 0 : i32
    return %c0_i32, %c0_i32_0 : i32, i32
  }
  func.func @transform_9(%arg0: i32) -> (i32, i32) {
    %c0_i32 = arith.constant 0 : i32
    %c0_i32_0 = arith.constant 0 : i32
    return %arg0, %c0_i32 : i32, i32
  }
}

</mosaic_0001>

<bundles_post_ra>
// kernel: forward.1
= control target key start
LH: loop header
LB: loop body
LE: loop exit
PB: predicated region body
PF: predicated region fallthrough
CT: control target
= control target key end

     0   :  { %vm641_vm0 = vcmask 556032   ;;  %vm645_vm1 = vcmask 1041408   ;;  %s2649_s0 = inlined_call_operand.vmem [shape: bf16[8,196], index: 0, kind: input, shape index: {}]   ;;  %s2650_s1 = inlined_call_operand.vmem [shape: bf16[196,1024], index: 1, kind: input, shape index: {}]   ;;  %s2651_s2 = inlined_call_operand.vmem [shape: f32[1,256], index: 2, kind: input, shape index: {}]   ;;  %s2652_s3 = inlined_call_operand.vmem [shape: bf16[256,512], index: 3, kind: input, shape index: {}]   ;;  %s2653_s4 = inlined_call_operand.vmem [shape: f32[1,128], index: 4, kind: input, shape index: {}]   ;;  %s2654_s5 = inlined_call_operand.vmem [shape: bf16[128,128], index: 5, kind: input, shape index: {}]   ;;  %s2655_s6 = inlined_call_operand.vmem [shape: f32[1,128], index: 6, kind: input, shape index: {}]   ;;  %s2656_s7 = inlined_call_operand.vmem [shape: bf16[128,10], index: 7, kind: input, shape index: {}]   ;;  %s2657_s8 = inlined_call_operand.vmem [shape: f32[1,10], index: 8, kind: input, shape index: {}]   ;;  %s2658_s9 = inlined_call_operand.hbm [shape: f32[8,10], index: 9, kind: output, shape index: {}]  }
   0x1   :  { %v35_v0 = vld [vmem:[%s2650_s1] sm:$0xff]  ;;  %v36_v2 = vld [vmem:[%s2650_s1 + $0x8] sm:$0xff] }
   0x2   :  { %v39_v1 = vld [vmem:[%s2650_s1 + $0x20] sm:$0xff]  ;;  %v40_v4 = vld [vmem:[%s2650_s1 + $0x28] sm:$0xff] }
   0x3   :  { %v1580_v3 = vcombine.high %v35_v0, %v39_v1  ;;  %v1579_v5 = vcombine.low %v35_v0, %v39_v1  ;;  %v43_v6 = vld [vmem:[%s2650_s1 + $0x40] sm:$0xff]  ;;  %v1582_v8 = vcombine.high %v36_v2, %v40_v4  ;;  %v1581_v9 = vcombine.low %v36_v2, %v40_v4  ;;  %v44_v11 = vld [vmem:[%s2650_s1 + $0x48] sm:$0xff] }
   0x4   :  { %v47_v7 = vld [vmem:[%s2650_s1 + $0x60] sm:$0xff]  ;;  %v48_v12 = vld [vmem:[%s2650_s1 + $0x68] sm:$0xff] }
   0x5   :  { %v1588_v10 = vcombine.high %v43_v6, %v47_v7  ;;  %v51_v13 = vld [vmem:[%s2650_s1 + $0x80] sm:$0xff]  ;;  %670 = vmatprep.subr.bf16.mxu0 %v1580_v3  ;;  %v1590_v14 = vcombine.high %v44_v11, %v48_v12  ;;  %v52_v16 = vld [vmem:[%s2650_s1 + $0x88] sm:$0xff]  ;;  %711 = vmatprep.subr.bf16.mxu1 %v1582_v8  ;;  %v1587_v18 = vcombine.low %v43_v6, %v47_v7 }
   0x6   :  { %v55_v15 = vld [vmem:[%s2650_s1 + $0xa0] sm:$0xff]  ;;  %v56_v17 = vld [vmem:[%s2650_s1 + $0xa8] sm:$0xff]  ;;  %671 = vmatpush1.bf16.msra.mxu0 %v1579_v5  ;;  %712 = vmatpush1.bf16.msra.mxu1 %v1581_v9  ;;  %v1589_v19 = vcombine.low %v44_v11, %v48_v12 }
   0x7   :  { %672 = vmatprep.subr.bf16.mxu0 %v1588_v10  ;;  %v1596_v20 = vcombine.high %v51_v13, %v55_v15  ;;  %713 = vmatprep.subr.bf16.mxu1 %v1590_v14  ;;  %v1598_v21 = vcombine.high %v52_v16, %v56_v17  ;;  %v59_v22 = vld [vmem:[%s2650_s1 + $0xc0] sm:$0xff]  ;;  %v60_v24 = vld [vmem:[%s2650_s1 + $0xc8] sm:$0xff]  ;;  %v1595_v26 = vcombine.low %v51_v13, %v55_v15 }
   0x8   :  { %v63_v23 = vld [vmem:[%s2650_s1 + $0xe0] sm:$0xff]  ;;  %v64_v25 = vld [vmem:[%s2650_s1 + $0xe8] sm:$0xff]  ;;  %v1597_v27 = vcombine.low %v52_v16, %v56_v17 }
   0x9   :  { %v1604_v28 = vcombine.high %v59_v22, %v63_v23  ;;  %v1606_v29 = vcombine.high %v60_v24, %v64_v25  ;;  %v67_v30 = vld [vmem:[%s2650_s1 + $0x100] sm:$0xff]  ;;  %v68_v32 = vld [vmem:[%s2650_s1 + $0x108] sm:$0xff]  ;;  %v1603_v34 = vcombine.low %v59_v22, %v63_v23  ;;  %v1605_v35 = vcombine.low %v60_v24, %v64_v25 }
   0xa   :  { %673 = vmatpush1.bf16.msra.mxu0 %v1587_v18  ;;  %714 = vmatpush1.bf16.msra.mxu1 %v1589_v19  ;;  %v71_v31 = vld [vmem:[%s2650_s1 + $0x120] sm:$0xff]  ;;  %v72_v33 = vld [vmem:[%s2650_s1 + $0x128] sm:$0xff] }
   0xb   :  { %674 = vmatprep.subr.bf16.mxu0 %v1596_v20  ;;  %715 = vmatprep.subr.bf16.mxu1 %v1598_v21  ;;  %v1612_v36 = vcombine.high %v67_v30, %v71_v31  ;;  %v1614_v37 = vcombine.high %v68_v32, %v72_v33  ;;  %v75_v38 = vld [vmem:[%s2650_s1 + $0x140] sm:$0xff]  ;;  %v76_v40 = vld [vmem:[%s2650_s1 + $0x148] sm:$0xff]  ;;  %v1611_v42 = vcombine.low %v67_v30, %v71_v31 }
   0xc   :  { %v79_v39 = vld [vmem:[%s2650_s1 + $0x160] sm:$0xff]  ;;  %v80_v41 = vld [vmem:[%s2650_s1 + $0x168] sm:$0xff]  ;;  %v1613_v44 = vcombine.low %v68_v32, %v72_v33 }
   0xd   :  { %v2109_v43 = vld [vmem:[%s2649_s0] sm:$0xff]  ;;  %v1620_v45 = vcombine.high %v75_v38, %v79_v39  ;;  %v1622_v46 = vcombine.high %v76_v40, %v80_v41  ;;  %v84_v50 = vld [vmem:[%s2650_s1 + $0x188] sm:$0xff]  ;;  %v1619_v52 = vcombine.low %v75_v38, %v79_v39  ;;  %v1621_v53 = vcombine.low %v76_v40, %v80_v41  ;;  %v38_v40 = vld [vmem:[%s2650_s1 + $0x18] sm:$0xff] }
   0xe   :  { %675 = vmatpush1.bf16.msra.mxu0 %v1595_v26  ;;  %716 = vmatpush1.bf16.msra.mxu1 %v1597_v27  ;;  %v83_v47 = vld [vmem:[%s2650_s1 + $0x180] sm:$0xff]  ;;  %v2119_v49 = vcombine.high %v2109_v43, %v2109_v43  ;;  %v88_v51 = vld [vmem:[%s2650_s1 + $0x1a8] sm:$0xff]  ;;  %v42_v41 = vld [vmem:[%s2650_s1 + $0x38] sm:$0xff] }
   0xf   :  { %676 = vmatprep.subr.bf16.mxu0 %v1604_v28  ;;  %717 = vmatprep.subr.bf16.mxu1 %v1606_v29  ;;  %v87_v48 = vld [vmem:[%s2650_s1 + $0x1a0] sm:$0xff]  ;;  %v1630_v55 = vcombine.high %v84_v50, %v88_v51  ;;  %v92_v58 = vld [vmem:[%s2650_s1 + $0x1c8] sm:$0xff]  ;;  %v1629_v61 = vcombine.low %v84_v50, %v88_v51  ;;  %v46_v50 = vld [vmem:[%s2650_s1 + $0x58] sm:$0xff] }
  0x10   :  { %1684 = vmatprep.mubr.msk.bf16.mxu0 %vm641_vm0, %v2119_v49  ;;  %v1628_v54 = vcombine.high %v83_v47, %v87_v48  ;;  %v91_v56 = vld [vmem:[%s2650_s1 + $0x1c0] sm:$0xff]  ;;  %1686 = vmatprep.mubr.msk.bf16.mxu1 %vm641_vm0, %v2119_v49  ;;  %v96_v59 = vld [vmem:[%s2650_s1 + $0x1e8] sm:$0xff]  ;;  %v1627_v60 = vcombine.low %v83_v47, %v87_v48  ;;  %v50_v51 = vld [vmem:[%s2650_s1 + $0x78] sm:$0xff] }
  0x11   :  { %v95_v57 = vld [vmem:[%s2650_s1 + $0x1e0] sm:$0xff]  ;;  %v1638_v63 = vcombine.high %v92_v58, %v96_v59  ;;  %v100_v2 = vld [vmem:[%s2650_s1 + $0x208] sm:$0xff]  ;;  %v1637_v5 = vcombine.low %v92_v58, %v96_v59  ;;  %v1585_v58 = vcombine.low %v38_v40, %v42_v41 }
  0x12   :  { %677 = vmatpush1.bf16.msra.mxu0 %v1603_v34  ;;  %718 = vmatpush1.bf16.msra.mxu1 %v1605_v35  ;;  %v1636_v62 = vcombine.high %v91_v56, %v95_v57  ;;  %v99_v0 = vld [vmem:[%s2650_s1 + $0x200] sm:$0xff]  ;;  %v104_v3 = vld [vmem:[%s2650_s1 + $0x228] sm:$0xff]  ;;  %v1635_v4 = vcombine.low %v91_v56, %v95_v57  ;;  %v37_v35 = vld [vmem:[%s2650_s1 + $0x10] sm:$0xff] }
  0x13   :  { %678 = vmatprep.subr.bf16.mxu0 %v1612_v36  ;;  %719 = vmatprep.subr.bf16.mxu1 %v1614_v37  ;;  %v103_v1 = vld [vmem:[%s2650_s1 + $0x220] sm:$0xff]  ;;  %v1646_v7 = vcombine.high %v100_v2, %v104_v3  ;;  %v108_v10 = vld [vmem:[%s2650_s1 + $0x248] sm:$0xff]  ;;  %v1645_v15 = vcombine.low %v100_v2, %v104_v3  ;;  %v41_v36 = vld [vmem:[%s2650_s1 + $0x30] sm:$0xff] }
  0x14   :  { %v1644_v6 = vcombine.high %v99_v0, %v103_v1  ;;  %v107_v8 = vld [vmem:[%s2650_s1 + $0x240] sm:$0xff]  ;;  %v112_v11 = vld [vmem:[%s2650_s1 + $0x268] sm:$0xff]  ;;  %v1643_v12 = vcombine.low %v99_v0, %v103_v1  ;;  %v1584_v48 = vcombine.high %v37_v35, %v41_v36  ;;  %v53_v56 = vld [vmem:[%s2650_s1 + $0x90] sm:$0xff]  ;;  %v1593_v1 = vcombine.low %v46_v50, %v50_v51 }
  0x15   :  { %v111_v9 = vld [vmem:[%s2650_s1 + $0x260] sm:$0xff]  ;;  %v116_v17 = vld [vmem:[%s2650_s1 + $0x288] sm:$0xff]  ;;  %v1654_v19 = vcombine.high %v108_v10, %v112_v11  ;;  %v1653_v23 = vcombine.low %v108_v10, %v112_v11  ;;  %v57_v57 = vld [vmem:[%s2650_s1 + $0xb0] sm:$0xff] }
  0x16   :  { %679 = vmatpush1.bf16.msra.mxu0 %v1611_v42  ;;  %720 = vmatpush1.bf16.msra.mxu1 %v1613_v44  ;;  %v115_v13 = vld [vmem:[%s2650_s1 + $0x280] sm:$0xff]  ;;  %v1652_v16 = vcombine.high %v107_v8, %v111_v9  ;;  %v120_v18 = vld [vmem:[%s2650_s1 + $0x2a8] sm:$0xff]  ;;  %v1651_v20 = vcombine.low %v107_v8, %v111_v9  ;;  %v65_v0 = vld [vmem:[%s2650_s1 + $0xf0] sm:$0xff]  ;;  %v1600_v2 = vcombine.high %v53_v56, %v57_v57 }
  0x17   :  { %680 = vmatprep.subr.bf16.mxu0 %v1620_v45  ;;  %721 = vmatprep.subr.bf16.mxu1 %v1622_v46  ;;  %v119_v14 = vld [vmem:[%s2650_s1 + $0x2a0] sm:$0xff]  ;;  %v124_v25 = vld [vmem:[%s2650_s1 + $0x2c8] sm:$0xff]  ;;  %v1662_v27 = vcombine.high %v116_v17, %v120_v18  ;;  %v1661_v30 = vcombine.low %v116_v17, %v120_v18  ;;  %v45_v45 = vld [vmem:[%s2650_s1 + $0x50] sm:$0xff] }
  0x18   :  { %v123_v21 = vld [vmem:[%s2650_s1 + $0x2c0] sm:$0xff]  ;;  %v1660_v24 = vcombine.high %v115_v13, %v119_v14  ;;  %v128_v26 = vld [vmem:[%s2650_s1 + $0x2e8] sm:$0xff]  ;;  %v1659_v28 = vcombine.low %v115_v13, %v119_v14  ;;  %v49_v46 = vld [vmem:[%s2650_s1 + $0x70] sm:$0xff] }
  0x19   :  { %v127_v22 = vld [vmem:[%s2650_s1 + $0x2e0] sm:$0xff]  ;;  %v132_v32 = vld [vmem:[%s2650_s1 + $0x308] sm:$0x33]  ;;  %v1670_v33 = vcombine.high %v124_v25, %v128_v26  ;;  %v1669_v37 = vcombine.low %v124_v25, %v128_v26  ;;  %v1592_v59 = vcombine.high %v45_v45, %v49_v46  ;;  %v62_v3 = vld [vmem:[%s2650_s1 + $0xd8] sm:$0xff] }
  0x1a   :  { %681 = vmatpush1.bf16.msra.mxu0 %v1619_v52  ;;  %722 = vmatpush1.bf16.msra.mxu1 %v1621_v53  ;;  %v131_v29 = vld [vmem:[%s2650_s1 + $0x300] sm:$0x33]  ;;  %v1668_v31 = vcombine.high %v123_v21, %v127_v22  ;;  %v1667_v34 = vcombine.low %v123_v21, %v127_v22  ;;  %v1678_v42 = vcombine.high %v132_v32, %v132_v32  ;;  %v73_v8 = vld [vmem:[%s2650_s1 + $0x130] sm:$0xff]  ;;  %v70_v11 = vld [vmem:[%s2650_s1 + $0x118] sm:$0xff] }
  0x1b   :  { %682 = vmatprep.subr.bf16.mxu0 %v1628_v54  ;;  %723 = vmatprep.subr.bf16.mxu1 %v1630_v55  ;;  %v1676_v38 = vcombine.high %v131_v29, %v131_v29  ;;  %v1675_v39 = vcombine.low %v131_v29, %v131_v29  ;;  %v1677_v44 = vcombine.low %v132_v32, %v132_v32 }
  0x1c   :  { %v1586_v53 = vcombine.high %v38_v40, %v42_v41  ;;  %v2227_v54 = vcombine.low %v2109_v43, %v2109_v43  ;;  %v1583_v55 = vcombine.low %v37_v35, %v41_v36  ;;  %v58_v43 = vld [vmem:[%s2650_s1 + $0xb8] sm:$0xff] }
  0x1d   :  { %v647_v47 = vsel %vm645_vm1, %v1675_v39, 0  ;;  %v653_v52 = vsel %vm645_vm1, %v1677_v44, 0 }
  0x1e   :  { %683 = vmatpush1.bf16.msra.mxu0 %v1627_v60  ;;  %724 = vmatpush1.bf16.msra.mxu1 %v1629_v61  ;;  %v54_v60 = vld [vmem:[%s2650_s1 + $0x98] sm:$0xff]  ;;  %v1594_v61 = vcombine.high %v46_v50, %v50_v51 }
  0x1f   :  { %684 = vmatprep.subr.bf16.mxu0 %v1636_v62  ;;  %725 = vmatprep.subr.bf16.mxu1 %v1638_v63  ;;  %v1591_v62 = vcombine.low %v45_v45, %v49_v46  ;;  %v61_v63 = vld [vmem:[%s2650_s1 + $0xd0] sm:$0xff]  ;;  %v1601_v9 = vcombine.low %v54_v60, %v58_v43 }
  0x20   :  { %v1608_v10 = vcombine.high %v61_v63, %v65_v0  ;;  %v1607_v13 = vcombine.low %v61_v63, %v65_v0 }
  0x22   :  { %685 = vmatpush1.bf16.msra.mxu0 %v1635_v4  ;;  %726 = vmatpush1.bf16.msra.mxu1 %v1637_v5  ;;  %v66_v4 = vld [vmem:[%s2650_s1 + $0xf8] sm:$0xff]  ;;  %v1602_v5 = vcombine.high %v54_v60, %v58_v43 }
  0x23   :  { %686 = vmatprep.subr.bf16.mxu0 %v1644_v6  ;;  %727 = vmatprep.subr.bf16.mxu1 %v1646_v7  ;;  %v1599_v6 = vcombine.low %v53_v56, %v57_v57  ;;  %v69_v7 = vld [vmem:[%s2650_s1 + $0x110] sm:$0xff]  ;;  %v1609_v14 = vcombine.low %v62_v3, %v66_v4 }
  0x26   :  { %687 = vmatpush1.bf16.msra.mxu0 %v1643_v12  ;;  %728 = vmatpush1.bf16.msra.mxu1 %v1645_v15  ;;  %v1610_v12 = vcombine.high %v62_v3, %v66_v4  ;;  %v1616_v15 = vcombine.high %v69_v7, %v73_v8 }
  0x27   :  { %688 = vmatprep.subr.bf16.mxu0 %v1652_v16  ;;  %729 = vmatprep.subr.bf16.mxu1 %v1654_v19 }
  0x2a   :  { %689 = vmatpush1.bf16.msra.mxu0 %v1651_v20  ;;  %730 = vmatpush1.bf16.msra.mxu1 %v1653_v23 }
  0x2b   :  { %690 = vmatprep.subr.bf16.mxu0 %v1660_v24  ;;  %731 = vmatprep.subr.bf16.mxu1 %v1662_v27 }
  0x2e   :  { %691 = vmatpush1.bf16.msra.mxu0 %v1659_v28  ;;  %732 = vmatpush1.bf16.msra.mxu1 %v1661_v30 }
  0x2f   :  { %692 = vmatprep.subr.bf16.mxu0 %v1668_v31  ;;  %733 = vmatprep.subr.bf16.mxu1 %v1670_v33 }
  0x32   :  { %693 = vmatpush1.bf16.msra.mxu0 %v1667_v34  ;;  %734 = vmatpush1.bf16.msra.mxu1 %v1669_v37 }
  0x33   :  { %1683 = vmatprep.subr.msk.bf16.mxu0 %vm645_vm1, %v1676_v38  ;;  %1685 = vmatprep.subr.msk.bf16.mxu1 %vm645_vm1, %v1678_v42 }
  0x36   :  { %695 = vmatpush1.bf16.msra.mxu0 %v647_v47  ;;  %736 = vmatpush1.bf16.msra.mxu1 %v653_v52 }
  0x37   :  { %752 = vmatprep.subr.bf16.mxu0 %v1584_v48  ;;  %793 = vmatprep.subr.bf16.mxu1 %v1586_v53 }
  0x39   :  { %703 = vmatmul.mubr.bf16.vlgmr.msra.gmra.mrb[0].mxu0 %v2227_v54  ;;  %744 = vmatmul.mubr.bf16.vlgmr.msra.gmra.mrb[0].mxu1 %v2227_v54 }
  0x3a   :  { %753 = vmatpush1.bf16.msra.mxu0 %v1583_v55  ;;  %794 = vmatpush1.bf16.msra.mxu1 %v1585_v58 }
  0x3b   :  { %754 = vmatprep.subr.bf16.mxu0 %v1592_v59  ;;  %795 = vmatprep.subr.bf16.mxu1 %v1594_v61 }
  0x3c   :  { %1688 = vmatprep.mubr.msk.bf16.mxu0 %vm641_vm0, %v2119_v49  ;;  %1690 = vmatprep.mubr.msk.bf16.mxu1 %vm641_vm0, %v2119_v49  ;;  %v74_v49 = vld [vmem:[%s2650_s1 + $0x138] sm:$0xff] }
  0x3e   :  { %755 = vmatpush1.bf16.msra.mxu0 %v1591_v62  ;;  %796 = vmatpush1.bf16.msra.mxu1 %v1593_v1 }
  0x3f   :  { %756 = vmatprep.subr.bf16.mxu0 %v1600_v2  ;;  %797 = vmatprep.subr.bf16.mxu1 %v1602_v5 }
  0x42   :  { %757 = vmatpush1.bf16.msra.mxu0 %v1599_v6  ;;  %798 = vmatpush1.bf16.msra.mxu1 %v1601_v9 }
  0x43   :  { %758 = vmatprep.subr.bf16.mxu0 %v1608_v10 }
  0x44   :  { %14 = vsyncpa [#allocation3], 0  ;;  %799 = vmatprep.subr.bf16.mxu1 %v1610_v12  ;;  %v1618_v16 = vcombine.high %v70_v11, %v74_v49  ;;  %v77_v17 = vld [vmem:[%s2650_s1 + $0x150] sm:$0xff]  ;;  %v78_v19 = vld [vmem:[%s2650_s1 + $0x158] sm:$0xff]  ;;  %v1615_v21 = vcombine.low %v69_v7, %v73_v8  ;;  %v1617_v22 = vcombine.low %v70_v11, %v74_v49  ;;  %vm1982_vm2 = vmmov 0   ;;  %s1983_s15 = smov [#allocation2]  }
  0x45   :  { %v81_v18 = vld [vmem:[%s2650_s1 + $0x170] sm:$0xff]  ;;  %v82_v20 = vld [vmem:[%s2650_s1 + $0x178] sm:$0xff]  ;;  %s1569_s16 = sshll.u32 %s1983_s15, 4  ;;  %vm1561_vm3 = vcmask 80896   ;;  %s1570_s16 = int_to_ptr.vmem [resolvable:$true] %s1569_s16 }
  0x46   :  { %759 = vmatpush1.bf16.msra.mxu0 %v1607_v13  ;;  %800 = vmatpush1.bf16.msra.mxu1 %v1609_v14  ;;  %v1624_v23 = vcombine.high %v77_v17, %v81_v18  ;;  %v1626_v24 = vcombine.high %v78_v19, %v82_v20  ;;  %v85_v25 = vld [vmem:[%s2650_s1 + $0x190] sm:$0xff]  ;;  %v86_v27 = vld [vmem:[%s2650_s1 + $0x198] sm:$0xff]  ;;  %v1623_v29 = vcombine.low %v77_v17, %v81_v18  ;;  %p1962_p1 = scmp.lt.s32.totalorder %s1570_s16, %s1570_s16 }
  0x47   :  { %760 = vmatprep.subr.bf16.mxu0 %v1616_v15  ;;  %801 = vmatprep.subr.bf16.mxu1 %v1618_v16  ;;  %v89_v26 = vld [vmem:[%s2650_s1 + $0x1b0] sm:$0xff]  ;;  %v90_v28 = vld [vmem:[%s2650_s1 + $0x1b8] sm:$0xff]  ;;  %v1625_v30 = vcombine.low %v78_v19, %v82_v20 }
  0x48   :  { %v1632_v31 = vcombine.high %v85_v25, %v89_v26  ;;  %v1634_v32 = vcombine.high %v86_v27, %v90_v28  ;;  %v93_v33 = vld [vmem:[%s2650_s1 + $0x1d0] sm:$0xff]  ;;  %v94_v35 = vld [vmem:[%s2650_s1 + $0x1d8] sm:$0xff]  ;;  %v1631_v37 = vcombine.low %v85_v25, %v89_v26  ;;  %v1633_v38 = vcombine.low %v86_v27, %v90_v28 }
  0x49   :  { %v97_v34 = vld [vmem:[%s2650_s1 + $0x1f0] sm:$0xff]  ;;  %v98_v36 = vld [vmem:[%s2650_s1 + $0x1f8] sm:$0xff] }
  0x4a   :  { %761 = vmatpush1.bf16.msra.mxu0 %v1615_v21  ;;  %802 = vmatpush1.bf16.msra.mxu1 %v1617_v22  ;;  %v1640_v39 = vcombine.high %v93_v33, %v97_v34  ;;  %v1642_v40 = vcombine.high %v94_v35, %v98_v36  ;;  %v101_v41 = vld [vmem:[%s2650_s1 + $0x210] sm:$0xff]  ;;  %v102_v44 = vld [vmem:[%s2650_s1 + $0x218] sm:$0xff]  ;;  %v1639_v46 = vcombine.low %v93_v33, %v97_v34 }
  0x4b   :  { %762 = vmatprep.subr.bf16.mxu0 %v1624_v23  ;;  %803 = vmatprep.subr.bf16.mxu1 %v1626_v24  ;;  %v105_v42 = vld [vmem:[%s2650_s1 + $0x230] sm:$0xff]  ;;  %v106_v45 = vld [vmem:[%s2650_s1 + $0x238] sm:$0xff]  ;;  %v1641_v47 = vcombine.low %v94_v35, %v98_v36 }
  0x4c   :  { %v1648_v48 = vcombine.high %v101_v41, %v105_v42  ;;  %v1650_v50 = vcombine.high %v102_v44, %v106_v45  ;;  %v109_v51 = vld [vmem:[%s2650_s1 + $0x250] sm:$0xff]  ;;  %v110_v53 = vld [vmem:[%s2650_s1 + $0x258] sm:$0xff]  ;;  %v1647_v56 = vcombine.low %v101_v41, %v105_v42  ;;  %v1649_v57 = vcombine.low %v102_v44, %v106_v45 }
  0x4d   :  { %v113_v52 = vld [vmem:[%s2650_s1 + $0x270] sm:$0xff]  ;;  %v114_v55 = vld [vmem:[%s2650_s1 + $0x278] sm:$0xff] }
  0x4e   :  { %763 = vmatpush1.bf16.msra.mxu0 %v1623_v29  ;;  %804 = vmatpush1.bf16.msra.mxu1 %v1625_v30  ;;  %v1656_v58 = vcombine.high %v109_v51, %v113_v52  ;;  %v1658_v59 = vcombine.high %v110_v53, %v114_v55  ;;  %v117_v60 = vld [vmem:[%s2650_s1 + $0x290] sm:$0xff]  ;;  %v118_v61 = vld [vmem:[%s2650_s1 + $0x298] sm:$0xff]  ;;  %v1655_v63 = vcombine.low %v109_v51, %v113_v52 }
  0x4f   :  { %764 = vmatprep.subr.bf16.mxu0 %v1632_v31  ;;  %805 = vmatprep.subr.bf16.mxu1 %v1634_v32  ;;  %v121_v43 = vld [vmem:[%s2650_s1 + $0x2b0] sm:$0xff]  ;;  %v122_v62 = vld [vmem:[%s2650_s1 + $0x2b8] sm:$0xff]  ;;  %v1657_v0 = vcombine.low %v110_v53, %v114_v55 }
  0x50   :  { %v1664_v1 = vcombine.high %v117_v60, %v121_v43  ;;  %v1666_v2 = vcombine.high %v118_v61, %v122_v62  ;;  %v125_v3 = vld [vmem:[%s2650_s1 + $0x2d0] sm:$0xff]  ;;  %v126_v5 = vld [vmem:[%s2650_s1 + $0x2d8] sm:$0xff]  ;;  %v1663_v7 = vcombine.low %v117_v60, %v121_v43  ;;  %v1665_v8 = vcombine.low %v118_v61, %v122_v62 }
  0x51   :  { %v129_v4 = vld [vmem:[%s2650_s1 + $0x2f0] sm:$0xff]  ;;  %v130_v6 = vld [vmem:[%s2650_s1 + $0x2f8] sm:$0xff] }
  0x52   :  { %765 = vmatpush1.bf16.msra.mxu0 %v1631_v37  ;;  %806 = vmatpush1.bf16.msra.mxu1 %v1633_v38  ;;  %v1672_v9 = vcombine.high %v125_v3, %v129_v4  ;;  %v1674_v10 = vcombine.high %v126_v5, %v130_v6  ;;  %v133_v11 = vld [vmem:[%s2650_s1 + $0x310] sm:$0x33]  ;;  %v134_v49 = vld [vmem:[%s2650_s1 + $0x318] sm:$0x33]  ;;  %v1671_v12 = vcombine.low %v125_v3, %v129_v4 }
  0x53   :  { %766 = vmatprep.subr.bf16.mxu0 %v1640_v39  ;;  %807 = vmatprep.subr.bf16.mxu1 %v1642_v40  ;;  %v1673_v13 = vcombine.low %v126_v5, %v130_v6  ;;  %v1680_v14 = vcombine.high %v133_v11, %v133_v11  ;;  %v1679_v15 = vcombine.low %v133_v11, %v133_v11  ;;  %v1847_v20 = vld [vmem:[%s2652_s3 + $0x4] ss:$16 sps:$4 sm:$0xff]   ;;  %v1850_v21 = vld [vmem:[%s2652_s3 + $0xc] ss:$16 sps:$4 sm:$0xff]   ;;  %v1845_v22 = vld [vmem:[%s2652_s3] ss:$16 sps:$4 sm:$0xff]  }
  0x54   :  { %v1682_v16 = vcombine.high %v134_v49, %v134_v49  ;;  %v1681_v17 = vcombine.low %v134_v49, %v134_v49  ;;  %v1848_v23 = vld [vmem:[%s2652_s3 + $0x8] ss:$16 sps:$4 sm:$0xff]   ;;  %v1853_v24 = vld [vmem:[%s2652_s3 + $0x24] ss:$16 sps:$4 sm:$0xff]   ;;  %v1856_v26 = vld [vmem:[%s2652_s3 + $0x2c] ss:$16 sps:$4 sm:$0xff]  }
  0x55   :  { %v659_v18 = vsel %vm645_vm1, %v1679_v15, 0  ;;  %v1854_v25 = vld [vmem:[%s2652_s3 + $0x28] ss:$16 sps:$4 sm:$0xff]   ;;  %v1859_v27 = vld [vmem:[%s2652_s3 + $0x44] ss:$16 sps:$4 sm:$0xff]  }
  0x56   :  { %767 = vmatpush1.bf16.msra.mxu0 %v1639_v46  ;;  %808 = vmatpush1.bf16.msra.mxu1 %v1641_v47  ;;  %v665_v19 = vsel %vm645_vm1, %v1681_v17, 0  ;;  %v1862_v28 = vld [vmem:[%s2652_s3 + $0x4c] ss:$16 sps:$4 sm:$0xff]   ;;  %v1857_v29 = vld [vmem:[%s2652_s3 + $0x40] ss:$16 sps:$4 sm:$0xff]  }
  0x57   :  { %768 = vmatprep.subr.bf16.mxu0 %v1648_v48  ;;  %809 = vmatprep.subr.bf16.mxu1 %v1650_v50  ;;  %v1860_v30 = vld [vmem:[%s2652_s3 + $0x48] ss:$16 sps:$4 sm:$0xff]   ;;  %v1865_v31 = vld [vmem:[%s2652_s3 + $0x64] ss:$16 sps:$4 sm:$0xff]   ;;  %v1868_v32 = vld [vmem:[%s2652_s3 + $0x6c] ss:$16 sps:$4 sm:$0xff]  }
  0x58   :  { %v1863_v33 = vld [vmem:[%s2652_s3 + $0x60] ss:$16 sps:$4 sm:$0xff]   ;;  %v1866_v34 = vld [vmem:[%s2652_s3 + $0x68] ss:$16 sps:$4 sm:$0xff]   ;;  %v1871_v35 = vld [vmem:[%s2652_s3 + $0x84] ss:$16 sps:$4 sm:$0xff]  }
  0x59   :  { %v1874_v36 = vld [vmem:[%s2652_s3 + $0x8c] ss:$16 sps:$4 sm:$0xff]   ;;  %v1869_v37 = vld [vmem:[%s2652_s3 + $0x80] ss:$16 sps:$4 sm:$0xff]   ;;  %v1872_v38 = vld [vmem:[%s2652_s3 + $0x88] ss:$16 sps:$4 sm:$0xff]  }
  0x5a   :  { %769 = vmatpush1.bf16.msra.mxu0 %v1647_v56  ;;  %810 = vmatpush1.bf16.msra.mxu1 %v1649_v57  ;;  %v1877_v39 = vld [vmem:[%s2652_s3 + $0xa4] ss:$16 sps:$4 sm:$0xff]   ;;  %v1880_v40 = vld [vmem:[%s2652_s3 + $0xac] ss:$16 sps:$4 sm:$0xff]   ;;  %v1875_v41 = vld [vmem:[%s2652_s3 + $0xa0] ss:$16 sps:$4 sm:$0xff]  }
  0x5b   :  { %770 = vmatprep.subr.bf16.mxu0 %v1656_v58  ;;  %811 = vmatprep.subr.bf16.mxu1 %v1658_v59  ;;  %v1878_v42 = vld [vmem:[%s2652_s3 + $0xa8] ss:$16 sps:$4 sm:$0xff]   ;;  %v1883_v44 = vld [vmem:[%s2652_s3 + $0xc4] ss:$16 sps:$4 sm:$0xff]   ;;  %v1886_v45 = vld [vmem:[%s2652_s3 + $0xcc] ss:$16 sps:$4 sm:$0xff]  }
  0x5c   :  { %v1881_v46 = vld [vmem:[%s2652_s3 + $0xc0] ss:$16 sps:$4 sm:$0xff]   ;;  %v1884_v47 = vld [vmem:[%s2652_s3 + $0xc8] ss:$16 sps:$4 sm:$0xff]   ;;  %v1889_v48 = vld [vmem:[%s2652_s3 + $0xe4] ss:$16 sps:$4 sm:$0xff]  }
  0x5d   :  { %v1892_v50 = vld [vmem:[%s2652_s3 + $0xec] ss:$16 sps:$4 sm:$0xff]   ;;  %v1887_v51 = vld [vmem:[%s2652_s3 + $0xe0] ss:$16 sps:$4 sm:$0xff]   ;;  %v1890_v52 = vld [vmem:[%s2652_s3 + $0xe8] ss:$16 sps:$4 sm:$0xff]  }
  0x5e   :  { %771 = vmatpush1.bf16.msra.mxu0 %v1655_v63  ;;  %812 = vmatpush1.bf16.msra.mxu1 %v1657_v0  ;;  %v1895_v53 = vld [vmem:[%s2652_s3 + $0x104] ss:$16 sps:$4 sm:$0xff]   ;;  %v1898_v55 = vld [vmem:[%s2652_s3 + $0x10c] ss:$16 sps:$4 sm:$0xff]   ;;  %v1893_v56 = vld [vmem:[%s2652_s3 + $0x100] ss:$16 sps:$4 sm:$0xff]  }
  0x5f   :  { %772 = vmatprep.subr.bf16.mxu0 %v1664_v1  ;;  %813 = vmatprep.subr.bf16.mxu1 %v1666_v2  ;;  %v1896_v57 = vld [vmem:[%s2652_s3 + $0x108] ss:$16 sps:$4 sm:$0xff]   ;;  %v1901_v58 = vld [vmem:[%s2652_s3 + $0x124] ss:$16 sps:$4 sm:$0xff]   ;;  %v1904_v59 = vld [vmem:[%s2652_s3 + $0x12c] ss:$16 sps:$4 sm:$0xff]  }
  0x60   :  { %v1899_v60 = vld [vmem:[%s2652_s3 + $0x120] ss:$16 sps:$4 sm:$0xff]   ;;  %v1902_v43 = vld [vmem:[%s2652_s3 + $0x128] ss:$16 sps:$4 sm:$0xff]   ;;  %v1907_v61 = vld [vmem:[%s2652_s3 + $0x144] ss:$16 sps:$4 sm:$0xff]  }
  0x61   :  { %v1910_v62 = vld [vmem:[%s2652_s3 + $0x14c] ss:$16 sps:$4 sm:$0xff]   ;;  %v1905_v63 = vld [vmem:[%s2652_s3 + $0x140] ss:$16 sps:$4 sm:$0xff]   ;;  %v1908_v0 = vld [vmem:[%s2652_s3 + $0x148] ss:$16 sps:$4 sm:$0xff]  }
  0x62   :  { %773 = vmatpush1.bf16.msra.mxu0 %v1663_v7  ;;  %814 = vmatpush1.bf16.msra.mxu1 %v1665_v8  ;;  %v1913_v1 = vld [vmem:[%s2652_s3 + $0x164] ss:$16 sps:$4 sm:$0xff]   ;;  %v1916_v2 = vld [vmem:[%s2652_s3 + $0x16c] ss:$16 sps:$4 sm:$0xff]   ;;  %v1911_v3 = vld [vmem:[%s2652_s3 + $0x160] ss:$16 sps:$4 sm:$0xff]  }
  0x63   :  { %774 = vmatprep.subr.bf16.mxu0 %v1672_v9  ;;  %815 = vmatprep.subr.bf16.mxu1 %v1674_v10  ;;  %v1914_v4 = vld [vmem:[%s2652_s3 + $0x168] ss:$16 sps:$4 sm:$0xff]   ;;  %v1919_v5 = vld [vmem:[%s2652_s3 + $0x184] ss:$16 sps:$4 sm:$0xff]   ;;  %v1922_v6 = vld [vmem:[%s2652_s3 + $0x18c] ss:$16 sps:$4 sm:$0xff]  }
  0x64   :  { %v1917_v7 = vld [vmem:[%s2652_s3 + $0x180] ss:$16 sps:$4 sm:$0xff]   ;;  %v1920_v8 = vld [vmem:[%s2652_s3 + $0x188] ss:$16 sps:$4 sm:$0xff]   ;;  %v1925_v9 = vld [vmem:[%s2652_s3 + $0x1a4] ss:$16 sps:$4 sm:$0xff]  }
  0x65   :  { %v1928_v10 = vld [vmem:[%s2652_s3 + $0x1ac] ss:$16 sps:$4 sm:$0xff]   ;;  %v1923_v11 = vld [vmem:[%s2652_s3 + $0x1a0] ss:$16 sps:$4 sm:$0xff]   ;;  %v1926_v49 = vld [vmem:[%s2652_s3 + $0x1a8] ss:$16 sps:$4 sm:$0xff]  }
  0x66   :  { %775 = vmatpush1.bf16.msra.mxu0 %v1671_v12  ;;  %816 = vmatpush1.bf16.msra.mxu1 %v1673_v13  ;;  %v1931_v12 = vld [vmem:[%s2652_s3 + $0x1c4] ss:$16 sps:$4 sm:$0xff]   ;;  %v1934_v13 = vld [vmem:[%s2652_s3 + $0x1cc] ss:$16 sps:$4 sm:$0xff]   ;;  %v1932_v15 = vld [vmem:[%s2652_s3 + $0x1c8] ss:$16 sps:$4 sm:$0xff]  }
  0x67   :  { %1687 = vmatprep.subr.msk.bf16.mxu0 %vm645_vm1, %v1680_v14  ;;  %1689 = vmatprep.subr.msk.bf16.mxu1 %vm645_vm1, %v1682_v16  ;;  %v1929_v14 = vld [vmem:[%s2652_s3 + $0x1c0] ss:$16 sps:$4 sm:$0xff]   ;;  %v1937_v16 = vld [vmem:[%s2652_s3 + $0x1e4] ss:$16 sps:$4 sm:$0xff]   ;;  %v1940_v17 = vld [vmem:[%s2652_s3 + $0x1ec] ss:$16 sps:$4 sm:$0xff]  }
  0x6a   :  { %777 = vmatpush1.bf16.msra.mxu0 %v659_v18  ;;  %818 = vmatpush1.bf16.msra.mxu1 %v665_v19  ;;  %v1935_v18 = vld [vmem:[%s2652_s3 + $0x1e0] ss:$16 sps:$4 sm:$0xff]   ;;  %v1938_v19 = vld [vmem:[%s2652_s3 + $0x1e8] ss:$16 sps:$4 sm:$0xff]  }
  0x6b   :  { %1242 = vmatprep.subr.bf16.mxu0 %v1847_v20  ;;  %1283 = vmatprep.subr.bf16.mxu1 %v1850_v21  ;;  %v1981_v20 = vmov 0.0  }
  0x6d   :  { %785 = vmatmul.mubr.bf16.vlgmr.msra.gmra.mrb[4].mxu0 %v2227_v54  ;;  %826 = vmatmul.mubr.bf16.vlgmr.msra.gmra.mrb[4].mxu1 %v2227_v54  ;;  %v1851_v54 = vld [vmem:[%s2652_s3 + $0x20] ss:$16 sps:$4 sm:$0xff]  }
  0x6e   :  { %1243 = vmatpush1.bf16.msra.mxu0 %v1845_v22  ;;  %1284 = vmatpush1.bf16.msra.mxu1 %v1848_v23 }
  0x6f   :  { %1244 = vmatprep.subr.bf16.mxu0 %v1853_v24  ;;  %1285 = vmatprep.subr.bf16.mxu1 %v1856_v26 }
  0x72   :  { %1245 = vmatpush1.bf16.msra.mxu0 %v1851_v54  ;;  %1286 = vmatpush1.bf16.msra.mxu1 %v1854_v25 }
  0x73   :  { %1246 = vmatprep.subr.bf16.mxu0 %v1859_v27  ;;  %1287 = vmatprep.subr.bf16.mxu1 %v1862_v28 }
  0x76   :  { %1247 = vmatpush1.bf16.msra.mxu0 %v1857_v29  ;;  %1288 = vmatpush1.bf16.msra.mxu1 %v1860_v30  ;;  %v842_v30 = vlaneseq }
  0x77   :  { %1248 = vmatprep.subr.bf16.mxu0 %v1865_v31  ;;  %1289 = vmatprep.subr.bf16.mxu1 %v1868_v32 }
  0x78   :  { %v843_v31 = vshrl.u32 %v842_v30, 7 }
  0x7a   :  { %1249 = vmatpush1.bf16.msra.mxu0 %v1863_v33  ;;  %1290 = vmatpush1.bf16.msra.mxu1 %v1866_v34  ;;  %v844_v32 = vsub.s32 0, %v843_v31  ;;  %v840_v33 = vld [vmem:[%s2651_s2] sm:$0x3]  ;;  %v848_v34 = vsub.s32 1, %v843_v31 }
  0x7b   :  { %1250 = vmatprep.subr.bf16.mxu0 %v1871_v35  ;;  %1291 = vmatprep.subr.bf16.mxu1 %v1874_v36 }
  0x7e   :  { %1251 = vmatpush1.bf16.msra.mxu0 %v1869_v37  ;;  %1292 = vmatpush1.bf16.msra.mxu1 %v1872_v38  ;;  %v845_v38 = vrot.slane %v840_v33, %v844_v32 }
  0x7f   :  { %1252 = vmatprep.subr.bf16.mxu0 %v1877_v39  ;;  %1293 = vmatprep.subr.bf16.mxu1 %v1880_v40 }
  0x82   :  { %1253 = vmatpush1.bf16.msra.mxu0 %v1875_v41  ;;  %1294 = vmatpush1.bf16.msra.mxu1 %v1878_v42  ;;  %v849_v42 = vrot.slane %v840_v33, %v848_v34 }
  0x83   :  { %1254 = vmatprep.subr.bf16.mxu0 %v1883_v44  ;;  %1295 = vmatprep.subr.bf16.mxu1 %v1886_v45 }
  0x86   :  { %1255 = vmatpush1.bf16.msra.mxu0 %v1881_v46  ;;  %1296 = vmatpush1.bf16.msra.mxu1 %v1884_v47 }
  0x87   :  { %1256 = vmatprep.subr.bf16.mxu0 %v1889_v48  ;;  %1297 = vmatprep.subr.bf16.mxu1 %v1892_v50 }
  0x8a   :  { %1257 = vmatpush1.bf16.msra.mxu0 %v1887_v51  ;;  %1298 = vmatpush1.bf16.msra.mxu1 %v1890_v52 }
  0x8b   :  { %1258 = vmatprep.subr.bf16.mxu0 %v1895_v53  ;;  %1299 = vmatprep.subr.bf16.mxu1 %v1898_v55 }
  0x8e   :  { %1259 = vmatpush1.bf16.msra.mxu0 %v1893_v56  ;;  %1300 = vmatpush1.bf16.msra.mxu1 %v1896_v57  ;;  %v1941_v57 = vld [vmem:[%s2654_s5] sm:$0xff]  }
  0x8f   :  { %1260 = vmatprep.subr.bf16.mxu0 %v1901_v58  ;;  %1301 = vmatprep.subr.bf16.mxu1 %v1904_v59  ;;  %v1942_v59 = vld [vmem:[%s2654_s5 + $0x8] sm:$0xff]  }
  0x92   :  { %1261 = vmatpush1.bf16.msra.mxu0 %v1899_v60  ;;  %1302 = vmatpush1.bf16.msra.mxu1 %v1902_v43  ;;  %v1943_v60 = vld [vmem:[%s2654_s5 + $0x10] sm:$0xff]   ;;  %v1944_v43 = vld [vmem:[%s2654_s5 + $0x18] sm:$0xff]  }
  0x93   :  { %1262 = vmatprep.subr.bf16.mxu0 %v1907_v61  ;;  %1303 = vmatprep.subr.bf16.mxu1 %v1910_v62  ;;  %v1945_v61 = vld [vmem:[%s2654_s5 + $0x20] sm:$0xff]   ;;  %v1946_v62 = vld [vmem:[%s2654_s5 + $0x28] sm:$0xff]  }
  0x96   :  { %1263 = vmatpush1.bf16.msra.mxu0 %v1905_v63  ;;  %1304 = vmatpush1.bf16.msra.mxu1 %v1908_v0  ;;  %v1947_v63 = vld [vmem:[%s2654_s5 + $0x30] sm:$0xff]   ;;  %v1948_v0 = vld [vmem:[%s2654_s5 + $0x38] sm:$0xff]  }
  0x97   :  { %1264 = vmatprep.subr.bf16.mxu0 %v1913_v1  ;;  %1305 = vmatprep.subr.bf16.mxu1 %v1916_v2  ;;  %v1949_v1 = vld [vmem:[%s2656_s7] sm:$0xff]   ;;  %v1950_v2 = vld [vmem:[%s2656_s7 + $0x8] sm:$0xff]  }
  0x9a   :  { %1265 = vmatpush1.bf16.msra.mxu0 %v1911_v3  ;;  %1306 = vmatpush1.bf16.msra.mxu1 %v1914_v4  ;;  %v1951_v3 = vld [vmem:[%s2656_s7 + $0x10] sm:$0xff]   ;;  %v1952_v4 = vld [vmem:[%s2656_s7 + $0x18] sm:$0xff]  }
  0x9b   :  { %1266 = vmatprep.subr.bf16.mxu0 %v1919_v5  ;;  %1307 = vmatprep.subr.bf16.mxu1 %v1922_v6  ;;  %v1953_v5 = vld [vmem:[%s2656_s7 + $0x20] sm:$0xff]   ;;  %v1954_v6 = vld [vmem:[%s2656_s7 + $0x28] sm:$0xff]  }
  0x9e   :  { %1267 = vmatpush1.bf16.msra.mxu0 %v1917_v7  ;;  %1308 = vmatpush1.bf16.msra.mxu1 %v1920_v8 }
  0x9f   :  { %1268 = vmatprep.subr.bf16.mxu0 %v1925_v9  ;;  %1309 = vmatprep.subr.bf16.mxu1 %v1928_v10 }
  0xa2   :  { %1269 = vmatpush1.bf16.msra.mxu0 %v1923_v11  ;;  %1310 = vmatpush1.bf16.msra.mxu1 %v1926_v49 }
  0xa3   :  { %1270 = vmatprep.subr.bf16.mxu0 %v1931_v12  ;;  %1311 = vmatprep.subr.bf16.mxu1 %v1934_v13 }
  0xa6   :  { %1271 = vmatpush1.bf16.msra.mxu0 %v1929_v14  ;;  %1312 = vmatpush1.bf16.msra.mxu1 %v1932_v15 }
  0xa7   :  { %1272 = vmatprep.subr.bf16.mxu0 %v1937_v16  ;;  %1313 = vmatprep.subr.bf16.mxu1 %v1940_v17  ;;  %v1755_v16 = vld [vmem:[%s2653_s4] ss:$0 sm:$0xff] }
  0xaa   :  { %1273 = vmatpush1.bf16.msra.mxu0 %v1935_v18  ;;  %1314 = vmatpush1.bf16.msra.mxu1 %v1938_v19 }
  0xab   :  { %1792 = vmatprep.subr.bf16.mxu0 %v1981_v20  ;;  %1812 = vmatprep.subr.bf16.mxu1 %v1981_v20 }
 0x10c   :  { %v704_v21 = vpop.f32.mrb[0].mxu0  ;;  %v745_v22 = vpop.f32.mrb[0].mxu1 }
 0x10d   :  { %v706_v23 = vpop.f32.mrb[1].mxu0  ;;  %v834_v54 = vmax.f32 %v704_v21, %v745_v22  ;;  %v747_v24 = vpop.f32.mrb[1].mxu1  ;;  %v1955_v22 = vld [vmem:[%s2656_s7 + $0x30] sm:$0xff]  }
 0x10e   :  { %v708_v25 = vpop.f32.mrb[2].mxu0  ;;  %v835_v26 = vmax.f32 %v706_v23, %v747_v24  ;;  %v749_v27 = vpop.f32.mrb[2].mxu1  ;;  %v1956_v23 = vld [vmem:[%s2656_s7 + $0x38] sm:$0xff]  }
 0x10f   :  { %v709_v28 = vpop.f32.mrb[3].mxu0  ;;  %v750_v29 = vpop.f32.mrb[3].mxu1 }
 0x140   :  { %v786_v35 = vpop.f32.mrb[4].mxu0  ;;  %v827_v37 = vpop.f32.mrb[4].mxu1 }
 0x141   :  { %v836_v36 = vmax.f32 %v834_v54, %v786_v35  ;;  %v788_v39 = vpop.f32.mrb[5].mxu0  ;;  %v829_v41 = vpop.f32.mrb[5].mxu1  ;;  %v1756_v54 = vld [vmem:[%s2655_s6] ss:$0 sm:$0xff]  ;;  %s1957_s6 = scalar_lea.vmem %s1570_s16, 128 }
 0x142   :  { %v837_v40 = vmax.f32 %v835_v26, %v788_v39  ;;  %v790_v44 = vpop.f32.mrb[6].mxu0  ;;  %v831_v46 = vpop.f32.mrb[6].mxu1  ;;  %p1958_p0 = scmp.ne.s32.totalorder %s1570_s16, %s1957_s6  ;;  %p1963_p2 = scmp.lt.s32.totalorder %s1957_s6, %s1957_s6 }
 0x143   :  { %v838_v45 = vmax.f32 %v836_v36, %v827_v37  ;;  %v791_v47 = vpop.f32.mrb[7].mxu0  ;;  %v832_v50 = vpop.f32.mrb[7].mxu1 }
 0x144   :  { %v839_v48 = vmax.f32 %v837_v40, %v829_v41  ;;  %p1964_p3 = por %p1963_p2, %p1962_p1 }
 0x145   :  { %v852_v51 = vadd.f32 %v845_v38, %v838_v45 }
 0x146   :  { %v853_v52 = vadd.f32 %v849_v42, %v839_v48  ;;  %p1965_p4 = pnand %p1964_p3, %p1958_p0 }
 0x147   :  { %v854_v53 = vmax.f32 %v852_v51, 0.0 }
 0x148   :  { %v855_v55 = vmax.f32 %v853_v52, 0.0 }
 0x149   :  { %v856_v58 = vpack.c.bf16 %v854_v53, %v854_v53 }
 0x14a   :  { %v857_v56 = vpack.c.bf16 %v855_v55, %v855_v55 }
 0x14c   :  { %1274 = vmatprep.mubr.bf16.mxu0 %v857_v56  ;;  %1315 = vmatprep.mubr.bf16.mxu1 %v857_v56 }
 0x14d   :  { %1275 = vmatmul.mubr.bf16.vlgmr.msra.gmra.mrb[8].mxu0 %v856_v58  ;;  %1316 = vmatmul.mubr.bf16.vlgmr.msra.gmra.mrb[8].mxu1 %v856_v58 }
 0x14e   :  { %1793 = vmatpush3.bf16.msra.mxu0 %v1941_v57  ;;  %1808 = vmatprep.mubr.msk.bf16.mxu0 %vm1982_vm2, %v1981_v20 }
 0x14f   :  { %1794 = vmatprep.subr.bf16.mxu0 %v1981_v20  ;;  %1828 = vmatprep.mubr.msk.bf16.mxu1 %vm1982_vm2, %v1981_v20 }
 0x150   :  { %1813 = vmatpush3.bf16.msra.mxu1 %v1949_v1 }
 0x151   :  { %1814 = vmatprep.subr.bf16.mxu1 %v1981_v20 }
 0x152   :  { %1795 = vmatpush3.bf16.msra.mxu0 %v1942_v59 }
 0x153   :  { %1796 = vmatprep.subr.bf16.mxu0 %v1981_v20 }
 0x154   :  { %1815 = vmatpush3.bf16.msra.mxu1 %v1950_v2 }
 0x155   :  { %1816 = vmatprep.subr.bf16.mxu1 %v1981_v20 }
 0x156   :  { %1797 = vmatpush3.bf16.msra.mxu0 %v1943_v60 }
 0x157   :  { %1798 = vmatprep.subr.bf16.mxu0 %v1981_v20 }
 0x158   :  { %1817 = vmatpush3.bf16.msra.mxu1 %v1951_v3 }
 0x159   :  { %1818 = vmatprep.subr.bf16.mxu1 %v1981_v20 }
 0x15a   :  { %1799 = vmatpush3.bf16.msra.mxu0 %v1944_v43 }
 0x15b   :  { %1800 = vmatprep.subr.bf16.mxu0 %v1981_v20 }
 0x15c   :  { %1819 = vmatpush3.bf16.msra.mxu1 %v1952_v4 }
 0x15d   :  { %1820 = vmatprep.subr.bf16.mxu1 %v1981_v20 }
 0x15e   :  { %1801 = vmatpush3.bf16.msra.mxu0 %v1945_v61 }
 0x15f   :  { %1802 = vmatprep.subr.bf16.mxu0 %v1981_v20 }
 0x160   :  { %1821 = vmatpush3.bf16.msra.mxu1 %v1953_v5 }
 0x161   :  { %1822 = vmatprep.subr.bf16.mxu1 %v1981_v20 }
 0x162   :  { %1803 = vmatpush3.bf16.msra.mxu0 %v1946_v62 }
 0x163   :  { %1804 = vmatprep.subr.bf16.mxu0 %v1981_v20 }
 0x164   :  { %1823 = vmatpush3.bf16.msra.mxu1 %v1954_v6 }
 0x165   :  { %1824 = vmatprep.subr.bf16.mxu1 %v1981_v20 }
 0x166   :  { %1805 = vmatpush3.bf16.msra.mxu0 %v1947_v63 }
 0x167   :  { %1806 = vmatprep.subr.bf16.mxu0 %v1981_v20 }
 0x168   :  { %1825 = vmatpush3.bf16.msra.mxu1 %v1955_v22 }
 0x169   :  { %1826 = vmatprep.subr.bf16.mxu1 %v1981_v20  ;;  %v1765_v20 = vld [vmem:[%s2657_s8] ss:$0 sm:$0xff] }
 0x16a   :  { %1807 = vmatpush3.bf16.msra.mxu0 %v1948_v0 }
 0x16c   :  { %1827 = vmatpush3.bf16.msra.mxu1 %v1956_v23 }
 0x220   :  { %v1276_v7 = vpop.f32.mrb[8].mxu0  ;;  %v1317_v8 = vpop.f32.mrb[8].mxu1 }
 0x221   :  { %v1278_v9 = vpop.f32.mrb[9].mxu0  ;;  %v1319_v10 = vpop.f32.mrb[9].mxu1 }
 0x222   :  { %v1324_v11 = vmax.f32 %v1276_v7, %v1278_v9  ;;  %v1280_v49 = vpop.f32.mrb[10].mxu0  ;;  %v1321_v12 = vpop.f32.mrb[10].mxu1 }
 0x223   :  { %v1281_v13 = vpop.f32.mrb[11].mxu0  ;;  %v1322_v14 = vpop.f32.mrb[11].mxu1 }
 0x224   :  { %v1325_v15 = vmax.f32 %v1324_v11, %v1317_v8 }
 0x226   :  { %v1326_v17 = vmax.f32 %v1325_v15, %v1319_v10 }
 0x228   :  { %v1334_v18 = vadd.f32 %v1755_v16, %v1326_v17 }
 0x22a   :  { %v1335_v19 = vmax.f32 %v1334_v18, 0.0 }
 0x22c   :  { %v1336_v21 = vpack.c.bf16 %v1335_v19, %v1335_v19 }
 0x22e   :  { %1809 = vmatmul.mubr.bf16.vlgmr.msra.gmra.mrb[12].mxu0 %v1336_v21 }
 0x301   :  { %v1442_v24 = vpop.f32.mrb[12].mxu0 }
 0x302   :  { %v1443_v25 = vadd.f32 %v1756_v54, %v1442_v24  ;;  %v1810_v26 = vpop.f32.mrb[13].mxu0 }
 0x303   :  { %v1445_v27 = vpop.f32.mrb[14].mxu0 }
 0x304   :  { %v1448_v28 = vmax.f32 %v1443_v25, 0.0  ;;  %v1811_v29 = vpop.f32.mrb[15].mxu0 }
 0x306   :  { %v1449_v30 = vpack.c.bf16 %v1448_v28, %v1448_v28 }
 0x308   :  { %1829 = vmatmul.mubr.bf16.vlgmr.msra.gmra.mrb[12].mxu1 %v1449_v30 }
 0x3db   :  { %v1555_v31 = vpop.f32.mrb[12].mxu1 }
 0x3dc   :  { %v1556_v32 = vadd.f32 %v1765_v20, %v1555_v31  ;;  %v1830_v33 = vpop.f32.mrb[13].mxu1 }
 0x3dd   :  { %v1558_v34 = vpop.f32.mrb[14].mxu1 }
 0x3de   :  { %v1831_v35 = vpop.f32.mrb[15].mxu1  ;;  %1562 = vst.msk [vmem:[#allocation2] sm:$0xff] %vm1561_vm3, %v1556_v32 }
 0x3df   :  { %1968 = shalt.err (!%p1965_p4)
}
 0x3e0   :  { %s1969_s8 = scalar_lea.hbm %s2658_s9, 128 }
 0x3e1   :  { %p1970_p5 = scmp.ne.s32.totalorder %s2658_s9, %s1969_s8  ;;  %p1973_p6 = scmp.lt.u32.totalorder %s1969_s8, %s2658_s9 }
 0x3e3   :  { %p1975_p7 = pnand %p1973_p6, %p1970_p5 }
 0x3e5   :  { %1978 = shalt.err (!%p1975_p7)
}
 0x3e6   :  { %1572 = dma.vmem_to_hbm [thread:$0]  %s1570_s16, 128, %s2658_s9, [#allocation3]  }
 0x3e7   :  { %1979 = dma.done.wait [#allocation3], 128  }
 0x3e8   :  { %1980 = vsyncadd [#allocation3], 4294967168 }
 0x3e9   :  { %1576 = vsyncpa [#allocation3], 1 }

</bundles_post_ra>
